<compile_context>
chip_gen: v5e
topology: v5e:2x2
jax: 0.10.0
libtpu: 0.0.40
codegen_flags: <defaults>
</compile_context>

<pallas_src>
import functools

import jax
import jax.numpy as jnp
import numpy as np
from jax import lax
from jax.experimental import pallas as pl
from jax.experimental.pallas import tpu as pltpu

EPS = 1e-5
_LANE = 128


def _round_up(x, m):
    return ((x + m - 1) // m) * m


def _stats_kernel(*refs, use_mask):
    """Pass 1: per-tile partial (parity, out-channel) sum and sum-of-squares of the conv output."""
    if use_mask:
        w_ref, p_ref, rowm_ref, colm_ref, prow_ref, pcol_ref, sum_ref, sq_ref = refs
    else:
        w_ref, p_ref, sum_ref, sq_ref = refs

    # (4*Cout, 4*Cin) @ (4*Cin, T) -> (4*Cout, T), bf16 operands, f32 accumulation on the MXU.
    y = jnp.dot(w_ref[...], p_ref[...], preferred_element_type=jnp.float32)

    if use_mask:
        # output_padding == 0: odd-row / odd-col parities have one extra row/col outside the
        # requested output_size. mult = 0 there, 1 elsewhere; built from host-precomputed
        # (1, T) validity vectors and static (4*Cout, 1) parity indicators (no div/mod).
        mult = ((1.0 - prow_ref[...] * (1.0 - rowm_ref[...]))
                * (1.0 - pcol_ref[...] * (1.0 - colm_ref[...])))      # (4*Cout, T)
        ym = y * mult
    else:
        ym = y  # zero-padded lane columns give y == 0 and contribute nothing

    sum_ref[...] = jnp.sum(ym, axis=1, keepdims=True)
    sq_ref[...] = jnp.sum(ym * y, axis=1, keepdims=True)


def _normalize_kernel(w_ref, scale_ref, shift_ref, p_ref, o_ref, *, alpha):
    """Pass 2: recompute the conv tile, apply folded BN scale/shift, LeakyReLU, store bf16."""
    y = jnp.dot(w_ref[...], p_ref[...], preferred_element_type=jnp.float32)   # (4*Cout, T)
    z = y * scale_ref[...] + shift_ref[...]
    o_ref[...] = jnp.where(z >= 0, z, alpha * z).astype(o_ref.dtype)


@functools.partial(jax.jit,
                   static_argnames=("output_size", "alpha", "tile_hw",
                                    "compute_dtype", "out_dtype"))
def conv_t_block_forward(x, wt, bias, gamma, beta, output_size, alpha=0.03,
                         tile_hw=2048, compute_dtype=jnp.bfloat16,
                         out_dtype=jnp.bfloat16):
    """Forward pass of conv_t_block.

    x:  (N, Cin, H, W) NCHW
    wt: (Cin, Cout, 3, 3)  PyTorch ConvTranspose2d weight layout
    bias, gamma, beta: (Cout,)
    output_size: (Hout, Wout) as passed to conv_t(x, output_size=...)

    Precision contract: MXU operands and the returned activations are bf16; all accumulation and
    BatchNorm / LeakyReLU math is f32.
    """
    # The conv-transpose bias is exactly cancelled by the training-mode BatchNorm mean
    # subtraction, so it is dead work and is dropped.
    del bias
    N, Cin, H, W = x.shape
    Cout = wt.shape[1]
    K, stride, padding = 3, 2, 1
    Hout, Wout = output_size
    op_h = Hout - ((H - 1) * stride - 2 * padding + K)
    op_w = Wout - ((W - 1) * stride - 2 * padding + K)
    assert 0 <= op_h < stride and 0 <= op_w < stride, "invalid output_size"

    # ---- sub-pixel weight matrix (4*Cout, 4*Cin): rows = (parity, cout), cols = (cin, dy, dx)
    # out[n, co, 2a+py, 2b+px] = sum_{ci,dy,dx} x_pad[n, ci, a+dy, b+dx] * w4[p, ci, co, dy, dx]
    w4 = jnp.zeros((4, Cin, Cout, 2, 2), wt.dtype)
    w4 = w4.at[0, :, :, 0, 0].set(wt[:, :, 1, 1])   # p=0: even row, even col
    w4 = w4.at[1, :, :, 0, 0].set(wt[:, :, 1, 2])   # p=1: even row, odd col
    w4 = w4.at[1, :, :, 0, 1].set(wt[:, :, 1, 0])
    w4 = w4.at[2, :, :, 0, 0].set(wt[:, :, 2, 1])   # p=2: odd row, even col
    w4 = w4.at[2, :, :, 1, 0].set(wt[:, :, 0, 1])
    w4 = w4.at[3, :, :, 0, 0].set(wt[:, :, 2, 2])   # p=3: odd row, odd col
    w4 = w4.at[3, :, :, 0, 1].set(wt[:, :, 2, 0])
    w4 = w4.at[3, :, :, 1, 0].set(wt[:, :, 0, 2])
    w4 = w4.at[3, :, :, 1, 1].set(wt[:, :, 0, 0])
    wmat = w4.transpose(0, 2, 1, 3, 4).reshape(4 * Cout, 4 * Cin).astype(compute_dtype)

    # ---- 2x2 im2col of the ORIGINAL input, built directly in bf16, batch flattened into lanes --
    # patches[ci*4 + dy*2 + dx, n*HW + a*W + b] = x_pad[n, ci, a+dy, b+dx]
    xpt = jnp.pad(x.astype(compute_dtype), ((0, 0), (0, 0), (0, 1), (0, 1)))
    xpt = xpt.transpose(1, 0, 2, 3)                                   # (Cin, N, H+1, W+1), cheap
    cols = [xpt[:, :, dy:dy + H, dx:dx + W] for dy in range(2) for dx in range(2)]
    patches = jnp.stack(cols, axis=1).reshape(Cin * 4, N * H * W)

    HW = H * W
    L = N * HW
    tile_hw = max(_LANE, (tile_hw // _LANE) * _LANE)
    T = min(tile_hw, _round_up(L, _LANE))
    Lp = _round_up(L, T)
    if Lp != L:
        patches = jnp.pad(patches, ((0, 0), (0, Lp - L)))
    n_t = Lp // T

    CO4, CI4 = 4 * Cout, 4 * Cin

    # ---- VMEM limit from the actual double-buffered working set, clamped to [16 MiB, 32 MiB] ----
    cd_b = jnp.dtype(compute_dtype).itemsize
    out_b = jnp.dtype(out_dtype).itemsize
    per_step = 2 * T * (CI4 * cd_b + CO4 * out_b + 2 * 4)     # patches + output + mask tiles, x2
    resident = 2 * CO4 * CI4 * cd_b + 8 * CO4 * 4
    vmem_limit = int(min(32 << 20, max(16 << 20, 8 * (per_step + resident))))

    # ---- optional validity masks (only when output_padding is 0 along a dim) -------------------
    use_mask = (op_h == 0) or (op_w == 0)
    stats_inputs = [wmat, patches]
    stats_specs = [
        pl.BlockSpec((CO4, CI4), lambda t: (0, 0)),
        pl.BlockSpec((CI4, T), lambda t: (0, t)),
    ]
    if use_mask:
        pos = np.arange(Lp)
        a_idx = (pos % HW) // W
        b_idx = pos % W
        in_img = pos < L
        rowm = np.where(in_img, (a_idx < H - 1 + op_h).astype(np.float32), 1.0).reshape(1, Lp)
        colm = np.where(in_img, (b_idx < W - 1 + op_w).astype(np.float32), 1.0).reshape(1, Lp)
        par = np.arange(CO4) // Cout
        prow = (par // 2 == 1).astype(np.float32).reshape(CO4, 1)     # parity has odd output row
        pcol = (par % 2 == 1).astype(np.float32).reshape(CO4, 1)      # parity has odd output col
        stats_inputs += [jnp.asarray(rowm), jnp.asarray(colm), jnp.asarray(prow), jnp.asarray(pcol)]
        stats_specs += [
            pl.BlockSpec((1, T), lambda t: (0, t)),
            pl.BlockSpec((1, T), lambda t: (0, t)),
            pl.BlockSpec((CO4, 1), lambda t: (0, 0)),
            pl.BlockSpec((CO4, 1), lambda t: (0, 0)),
        ]

    # ---- pass 1: per-tile partial sum / sum-of-squares (fully parallel grid, host reduce) -------
    stats_kernel = functools.partial(_stats_kernel, use_mask=use_mask)
    psum, psq = pl.pallas_call(
        stats_kernel,
        out_shape=(jax.ShapeDtypeStruct((n_t, CO4, 1), jnp.float32),
                   jax.ShapeDtypeStruct((n_t, CO4, 1), jnp.float32)),
        grid_spec=pltpu.PrefetchScalarGridSpec(
            num_scalar_prefetch=0,
            grid=(n_t,),
            in_specs=stats_specs,
            out_specs=(
                pl.BlockSpec((None, CO4, 1), lambda t: (t, 0, 0)),
                pl.BlockSpec((None, CO4, 1), lambda t: (t, 0, 0)),
            ),
        ),
        compiler_params=pltpu.CompilerParams(
            dimension_semantics=("parallel",),
            vmem_limit_bytes=vmem_limit),
    )(*stats_inputs)

    # ---- fold BN (training-mode, biased variance) + gamma/beta into one scale/shift (tiny) -----
    # NOTE: E[y^2] - E[y]^2 in f32; fine at these scales (activations roughly zero-mean).
    count = N * Hout * Wout
    s = psum.sum(axis=0).reshape(4, Cout).sum(axis=0)
    ss = psq.sum(axis=0).reshape(4, Cout).sum(axis=0)
    mean = s / count
    var = jnp.maximum(ss / count - mean * mean, 0.0)
    scale = gamma.astype(jnp.float32) * lax.rsqrt(var + EPS)
    shift = beta.astype(jnp.float32) - mean * scale
    scale4 = jnp.tile(scale.reshape(Cout, 1), (4, 1))   # (4*Cout, 1), rows = parity*Cout + co
    shift4 = jnp.tile(shift.reshape(Cout, 1), (4, 1))

    # ---- pass 2: recompute the conv per tile, normalize, LeakyReLU, store bf16 -----------------
    norm_kernel = functools.partial(_normalize_kernel, alpha=alpha)
    out_flat = pl.pallas_call(
        norm_kernel,
        out_shape=jax.ShapeDtypeStruct((CO4, Lp), out_dtype),
        grid_spec=pltpu.PrefetchScalarGridSpec(
            num_scalar_prefetch=0,
            grid=(n_t,),
            in_specs=[
                pl.BlockSpec((CO4, CI4), lambda t: (0, 0)),
                pl.BlockSpec((CO4, 1), lambda t: (0, 0)),
                pl.BlockSpec((CO4, 1), lambda t: (0, 0)),
                pl.BlockSpec((CI4, T), lambda t: (0, t)),
            ],
            out_specs=pl.BlockSpec((CO4, T), lambda t: (0, t)),
        ),
        compiler_params=pltpu.CompilerParams(
            dimension_semantics=("parallel",),
            vmem_limit_bytes=vmem_limit),
    )(wmat, scale4, shift4, patches)

    # ---- parity interleave back to NCHW (cheap reshape/transpose of the bf16 output) -----------
    out = out_flat[:, :L].reshape(2, 2, Cout, N, H, W)        # (py, px, co, n, a, b)
    out = out.transpose(3, 2, 4, 0, 5, 1).reshape(N, Cout, 2 * H, 2 * W)
    return out[:, :, :Hout, :Wout]


def _reference(x, wt, bias, gamma, beta, output_size, alpha=0.03):
    """Pure-JAX f32 reference of the same forward pass (sanity check)."""
    N, Cin, H, W = x.shape
    Cout = wt.shape[1]
    K, stride, padding = 3, 2, 1
    Hout, Wout = output_size
    op_h = Hout - ((H - 1) * stride - 2 * padding + K)
    op_w = Wout - ((W - 1) * stride - 2 * padding + K)
    pad = K - 1 - padding
    wconv = jnp.flip(wt, axis=(2, 3)).transpose(1, 0, 2, 3)  # (Cout, Cin, K, K)
    y = lax.conv_general_dilated(
        x, wconv, window_strides=(1, 1),
        padding=[(pad, pad + op_h), (pad, pad + op_w)],
        lhs_dilation=(stride, stride),
        dimension_numbers=("NCHW", "OIHW", "NCHW"),
    ) + bias.reshape(1, Cout, 1, 1)
    mean = jnp.mean(y, axis=(0, 2, 3), keepdims=True)
    var = jnp.mean((y - mean) ** 2, axis=(0, 2, 3), keepdims=True)
    z = (y - mean) * lax.rsqrt(var + EPS) * gamma.reshape(1, Cout, 1, 1) + beta.reshape(1, Cout, 1, 1)
    return jnp.where(z >= 0, z, alpha * z)


if __name__ == "__main__":
    key = jax.random.PRNGKey(0)
    k1, k2, k3, k4, k5 = jax.random.split(key, 5)

    N, Cin, Cout, H, W = 2, 4, 4, 16, 16

    x = jax.random.normal(k1, (N, Cin, H, W), jnp.float32)
    wt = jax.random.normal(k2, (Cin, Cout, 3, 3), jnp.float32) * 0.1
    # Pre-round to bf16-representable values so the bf16 MXU path and the f32 XLA reference see
    # identical operands; the comparison then isolates algorithmic + output-rounding differences.
    x = x.astype(jnp.bfloat16).astype(jnp.float32)
    wt = wt.astype(jnp.bfloat16).astype(jnp.float32)
    bias = jax.random.normal(k3, (Cout,), jnp.float32) * 0.1
    gamma = 1.0 + 0.1 * jax.random.normal(k4, (Cout,), jnp.float32)
    beta = 0.1 * jax.random.normal(k5, (Cout,), jnp.float32)

    # Typical U-Net upsample (output_padding=1) and the output_padding=0 case.
    for output_size in [(2 * H, 2 * W), (2 * H - 1, 2 * W - 1)]:
        out = jax.block_until_ready(
            conv_t_block_forward(x, wt, bias, gamma, beta, output_size=output_size))
        ref = jax.block_until_ready(_reference(x, wt, bias, gamma, beta, output_size))
        # Output is stored in bf16 -> compare at bf16-level tolerance.
        np.testing.assert_allclose(np.asarray(out.astype(jnp.float32)), np.asarray(ref),
                                   rtol=2e-2, atol=2e-2)

    print("KERNEL_OK")
</pallas_src>

<mosaic_0001>
module attributes {stable_mosaic.version = 11 : i64} {
  func.func @_stats_kernel(%arg0: i32, %arg1: memref<16x16xbf16, #tpu.memory_space<vmem>>, %arg2: memref<16x512xbf16, #tpu.memory_space<vmem>>, %arg3: memref<1x16x1xf32, #tpu.memory_space<vmem>>, %arg4: memref<1x16x1xf32, #tpu.memory_space<vmem>>) attributes {dimension_semantics = [#tpu.dimension_semantics<parallel>], iteration_bounds = array<i64: 1>, scalar_prefetch = 0 : i64, scratch_operands = 0 : i64, tpu.core_type = #tpu.core_type<tc>, window_params = [{pipeline_mode = #tpu.pipeline_mode<synchronous>, transform_indices = @transform_0, window_bounds = array<i64: 16, 16>}, {transform_indices = @transform_1, window_bounds = array<i64: 16, 512>}, {transform_indices = @transform_2, window_bounds = array<i64: 1, 16, 1>}, {transform_indices = @transform_3, window_bounds = array<i64: 1, 16, 1>}]} {
    %c0 = arith.constant 0 : index
    %c0_0 = arith.constant 0 : index
    %0 = vector.load %arg1[%c0, %c0_0] : memref<16x16xbf16, #tpu.memory_space<vmem>>, vector<16x16xbf16>
    %c0_1 = arith.constant 0 : index
    %c0_2 = arith.constant 0 : index
    %1 = vector.load %arg2[%c0_1, %c0_2] : memref<16x512xbf16, #tpu.memory_space<vmem>>, vector<16x512xbf16>
    %cst = arith.constant dense<0.000000e+00> : vector<16x512xf32>
    %2 = tpu.matmul %0, %1, %cst {dimension_numbers = #tpu.dot_dimension_numbers<[1], [0], [0], [1], [0, 0, 1, 1], [], []>} : vector<16x16xbf16>, vector<16x512xbf16>, vector<16x512xf32> -> vector<16x512xf32>
    %cst_3 = arith.constant dense<0.000000e+00> : vector<16xf32>
    %3 = vector.multi_reduction <add>, %2, %cst_3 [1] : vector<16x512xf32> to vector<16xf32>
    %4 = vector.shape_cast %3 : vector<16xf32> to vector<16x1xf32>
    %c0_4 = arith.constant 0 : index
    %c0_5 = arith.constant 0 : index
    %c0_6 = arith.constant 0 : index
    %5 = vector.load %arg3[%c0_4, %c0_5, %c0_6] : memref<1x16x1xf32, #tpu.memory_space<vmem>>, vector<1x16x1xf32>
    %6 = vector.shape_cast %5 : vector<1x16x1xf32> to vector<16x1xf32>
    %7 = vector.shape_cast %4 : vector<16x1xf32> to vector<1x16x1xf32>
    tpu.vector_store %arg3[%c0_4, %c0_5, %c0_6], %7 {strides = array<i32>} : memref<1x16x1xf32, #tpu.memory_space<vmem>>, vector<1x16x1xf32>,
    %8 = arith.mulf %2, %2 : vector<16x512xf32>
    %cst_7 = arith.constant dense<0.000000e+00> : vector<16xf32>
    %9 = vector.multi_reduction <add>, %8, %cst_7 [1] : vector<16x512xf32> to vector<16xf32>
    %10 = vector.shape_cast %9 : vector<16xf32> to vector<16x1xf32>
    %c0_8 = arith.constant 0 : index
    %c0_9 = arith.constant 0 : index
    %c0_10 = arith.constant 0 : index
    %11 = vector.load %arg4[%c0_8, %c0_9, %c0_10] : memref<1x16x1xf32, #tpu.memory_space<vmem>>, vector<1x16x1xf32>
    %12 = vector.shape_cast %11 : vector<1x16x1xf32> to vector<16x1xf32>
    %13 = vector.shape_cast %10 : vector<16x1xf32> to vector<1x16x1xf32>
    tpu.vector_store %arg4[%c0_8, %c0_9, %c0_10], %13 {strides = array<i32>} : memref<1x16x1xf32, #tpu.memory_space<vmem>>, vector<1x16x1xf32>,
    return
  }
  func.func @transform_0(%arg0: i32) -> (i32, i32) {
    %c0_i32 = arith.constant 0 : i32
    %c0_i32_0 = arith.constant 0 : i32
    %c0_i32_1 = arith.constant 0 : i32
    return %c0_i32, %c0_i32_0 : i32, i32
  }
  func.func @transform_1(%arg0: i32) -> (i32, i32) {
    %c0_i32 = arith.constant 0 : i32
    %c0_i32_0 = arith.constant 0 : i32
    return %c0_i32, %arg0 : i32, i32
  }
  func.func @transform_2(%arg0: i32) -> (i32, i32, i32) {
    %c0_i32 = arith.constant 0 : i32
    %c0_i32_0 = arith.constant 0 : i32
    %c0_i32_1 = arith.constant 0 : i32
    return %arg0, %c0_i32, %c0_i32_0 : i32, i32, i32
  }
  func.func @transform_3(%arg0: i32) -> (i32, i32, i32) {
    %c0_i32 = arith.constant 0 : i32
    %c0_i32_0 = arith.constant 0 : i32
    %c0_i32_1 = arith.constant 0 : i32
    return %arg0, %c0_i32, %c0_i32_0 : i32, i32, i32
  }
}

module attributes {stable_mosaic.version = 11 : i64} {
  func.func @_normalize_kernel(%arg0: i32, %arg1: memref<16x16xbf16, #tpu.memory_space<vmem>>, %arg2: memref<16x1xf32, #tpu.memory_space<vmem>>, %arg3: memref<16x1xf32, #tpu.memory_space<vmem>>, %arg4: memref<16x512xbf16, #tpu.memory_space<vmem>>, %arg5: memref<16x512xbf16, #tpu.memory_space<vmem>>) attributes {dimension_semantics = [#tpu.dimension_semantics<parallel>], iteration_bounds = array<i64: 1>, scalar_prefetch = 0 : i64, scratch_operands = 0 : i64, tpu.core_type = #tpu.core_type<tc>, window_params = [{pipeline_mode = #tpu.pipeline_mode<synchronous>, transform_indices = @transform_0, window_bounds = array<i64: 16, 16>}, {pipeline_mode = #tpu.pipeline_mode<synchronous>, transform_indices = @transform_1, window_bounds = array<i64: 16, 1>}, {pipeline_mode = #tpu.pipeline_mode<synchronous>, transform_indices = @transform_2, window_bounds = array<i64: 16, 1>}, {transform_indices = @transform_3, window_bounds = array<i64: 16, 512>}, {transform_indices = @transform_4, window_bounds = array<i64: 16, 512>}]} {
    %c0 = arith.constant 0 : index
    %c0_0 = arith.constant 0 : index
    %0 = vector.load %arg1[%c0, %c0_0] : memref<16x16xbf16, #tpu.memory_space<vmem>>, vector<16x16xbf16>
    %c0_1 = arith.constant 0 : index
    %c0_2 = arith.constant 0 : index
    %1 = vector.load %arg4[%c0_1, %c0_2] : memref<16x512xbf16, #tpu.memory_space<vmem>>, vector<16x512xbf16>
    %cst = arith.constant dense<0.000000e+00> : vector<16x512xf32>
    %2 = tpu.matmul %0, %1, %cst {dimension_numbers = #tpu.dot_dimension_numbers<[1], [0], [0], [1], [0, 0, 1, 1], [], []>} : vector<16x16xbf16>, vector<16x512xbf16>, vector<16x512xf32> -> vector<16x512xf32>
    %c0_3 = arith.constant 0 : index
    %c0_4 = arith.constant 0 : index
    %3 = vector.load %arg2[%c0_3, %c0_4] : memref<16x1xf32, #tpu.memory_space<vmem>>, vector<16x1xf32>
    %4 = vector.broadcast %3 : vector<16x1xf32> to vector<16x512xf32>
    %5 = arith.mulf %2, %4 : vector<16x512xf32>
    %c0_5 = arith.constant 0 : index
    %c0_6 = arith.constant 0 : index
    %6 = vector.load %arg3[%c0_5, %c0_6] : memref<16x1xf32, #tpu.memory_space<vmem>>, vector<16x1xf32>
    %7 = vector.broadcast %6 : vector<16x1xf32> to vector<16x512xf32>
    %8 = arith.addf %5, %7 : vector<16x512xf32>
    %cst_7 = arith.constant 0.000000e+00 : f32
    %9 = vector.broadcast %cst_7 : f32 to vector<16x512xf32>
    %10 = arith.cmpf oge, %8, %9 : vector<16x512xf32>
    %cst_8 = arith.constant 3.000000e-02 : f32
    %11 = vector.broadcast %cst_8 : f32 to vector<16x512xf32>
    %12 = arith.mulf %11, %8 : vector<16x512xf32>
    %13 = arith.select %10, %8, %12 : vector<16x512xi1>, vector<16x512xf32>
    %14 = arith.truncf %13 : vector<16x512xf32> to vector<16x512xbf16>
    %c0_9 = arith.constant 0 : index
    %c0_10 = arith.constant 0 : index
    %15 = vector.load %arg5[%c0_9, %c0_10] : memref<16x512xbf16, #tpu.memory_space<vmem>>, vector<16x512xbf16>
    tpu.vector_store %arg5[%c0_9, %c0_10], %14 {strides = array<i32>} : memref<16x512xbf16, #tpu.memory_space<vmem>>, vector<16x512xbf16>,
    return
  }
  func.func @transform_0(%arg0: i32) -> (i32, i32) {
    %c0_i32 = arith.constant 0 : i32
    %c0_i32_0 = arith.constant 0 : i32
    %c0_i32_1 = arith.constant 0 : i32
    return %c0_i32, %c0_i32_0 : i32, i32
  }
  func.func @transform_1(%arg0: i32) -> (i32, i32) {
    %c0_i32 = arith.constant 0 : i32
    %c0_i32_0 = arith.constant 0 : i32
    %c0_i32_1 = arith.constant 0 : i32
    return %c0_i32, %c0_i32_0 : i32, i32
  }
  func.func @transform_2(%arg0: i32) -> (i32, i32) {
    %c0_i32 = arith.constant 0 : i32
    %c0_i32_0 = arith.constant 0 : i32
    %c0_i32_1 = arith.constant 0 : i32
    return %c0_i32, %c0_i32_0 : i32, i32
  }
  func.func @transform_3(%arg0: i32) -> (i32, i32) {
    %c0_i32 = arith.constant 0 : i32
    %c0_i32_0 = arith.constant 0 : i32
    return %c0_i32, %arg0 : i32, i32
  }
  func.func @transform_4(%arg0: i32) -> (i32, i32) {
    %c0_i32 = arith.constant 0 : i32
    %c0_i32_0 = arith.constant 0 : i32
    return %c0_i32, %arg0 : i32, i32
  }
}

</mosaic_0001>

<bundles_post_ra>
// kernel: conv_t_block_forward.2
= control target key start
LH: loop header
LB: loop body
LE: loop exit
PB: predicated region body
PF: predicated region fallthrough
CT: control target
= control target key end

     0   :  { %vm45_vm0 = vcmask 130048   ;;  %vm115_vm1 = vcmask 7168   ;;  %s234_s1 = inlined_call_operand.vmem [shape: bf16[16,512], index: 1, kind: input, shape index: {}]   ;;  %s235_s0 = inlined_call_operand.vmem [shape: bf16[16,16], index: 0, kind: input, shape index: {}]   ;;  %s236_s2 = inlined_call_operand.vmem [shape: f32[1,16,1], index: 2, kind: output, shape index: {0}]   ;;  %s237_s3 = inlined_call_operand.vmem [shape: f32[1,16,1], index: 3, kind: output, shape index: {1}]  }
   0x1   :  { %v152_v0 = vld [vmem:[%s234_s1] sm:$0xf]  ;;  %v173_v1 = vld [vmem:[%s234_s1 + $0xc] sm:$0xf0]  ;;  %v171_v2 = vld [vmem:[%s234_s1 + $0x4] sm:$0xf] }
   0x2   :  { %v153_v3 = vor.u32 %v173_v1, %v152_v0  ;;  %v154_v4 = vld [vmem:[%s234_s1 + $0x10] sm:$0xf0]  ;;  %v160_v5 = vld [vmem:[%s234_s1 + $0x8] sm:$0xf]  ;;  %v174_v6 = vld [vmem:[%s234_s1 + $0x14] sm:$0xf0] }
   0x3   :  { %v157_v7 = vor.u32 %v171_v2, %v154_v4  ;;  %v161_v8 = vor.u32 %v174_v6, %v160_v5  ;;  %v172_v9 = vld [vmem:[%s234_s1 + $0xc] sm:$0xf]  ;;  %v162_v10 = vld [vmem:[%s234_s1 + $0x18] sm:$0xf0]  ;;  %v170_v11 = vld [vmem:[%s235_s0] sm:$0xff] }
   0x4   :  { %56 = vmatpush.bf16.msra.mxu0 %v153_v3  ;;  %v165_v12 = vor.u32 %v172_v9, %v162_v10 }
   0x5   :  { %70 = vmatpush.bf16.msra.mxu1 %v157_v7  ;;  %84 = vmatpush.bf16.msra.mxu2 %v161_v8 }
   0x6   :  { %98 = vmatpush.bf16.msra.mxu3 %v165_v12 }
   0x7   :  { %166 = vmatmul.msk.bf16.vlgmr.msra.gmra.mxu0 %vm45_vm0, %v170_v11 }
   0x8   :  { %167 = vmatmul.msk.bf16.vlgmr.msra.gmra.mxu1 %vm45_vm0, %v170_v11  ;;  %168 = vmatmul.msk.bf16.vlgmr.msra.gmra.mxu2 %vm45_vm0, %v170_v11 }
   0x9   :  { %169 = vmatmul.msk.bf16.vlgmr.msra.gmra.mxu3 %vm45_vm0, %v170_v11 }
  0x84   :  { %v58_v13 = vpop.f32.mrf.mxu0 }
  0x85   :  { %v72_v14 = vpop.f32.mrf.mxu1  ;;  %v118_v15 = vmul.f32 %v58_v13, %v58_v13 }
  0x86   :  { %v119_v16 = vmul.f32 %v72_v14, %v72_v14  ;;  %v105_v17 = vadd.f32 %v72_v14, %v58_v13 }
  0x88   :  { %v126_v18 = vadd.f32 %v119_v16, %v118_v15 }
  0x8b   :  { %v86_v19 = vpop.f32.mrf.mxu2 }
  0x8c   :  { %v106_v20 = vadd.f32 %v105_v17, %v86_v19  ;;  %v120_v21 = vmul.f32 %v86_v19, %v86_v19  ;;  %v100_v22 = vpop.f32.mrf.mxu3  ;;  %v60_v24 = vpop.f32.mrf.mxu0 }
  0x8d   :  { %v121_v23 = vmul.f32 %v100_v22, %v100_v22  ;;  %v74_v25 = vpop.f32.mrf.mxu1  ;;  %v122_v28 = vmul.f32 %v60_v24, %v60_v24 }
  0x8e   :  { %v107_v26 = vadd.f32 %v106_v20, %v100_v22  ;;  %v127_v27 = vadd.f32 %v126_v18, %v120_v21  ;;  %v123_v29 = vmul.f32 %v74_v25, %v74_v25  ;;  %v110_v31 = vadd.f32 %v74_v25, %v60_v24 }
  0x90   :  { %108 = vadd.xlane.f32.xlu0 %v107_v26  ;;  %v128_v30 = vadd.f32 %v127_v27, %v121_v23  ;;  %v131_v33 = vadd.f32 %v123_v29, %v122_v28 }
  0x92   :  { %129 = vadd.xlane.f32.xlu1 %v128_v30 }
  0x93   :  { %v88_v32 = vpop.f32.mrf.mxu2 }
  0x94   :  { %v111_v34 = vadd.f32 %v110_v31, %v88_v32  ;;  %v124_v35 = vmul.f32 %v88_v32, %v88_v32  ;;  %v102_v36 = vpop.f32.mrf.mxu3 }
  0x95   :  { %v125_v39 = vmul.f32 %v102_v36, %v102_v36 }
  0x96   :  { %v132_v37 = vadd.f32 %v131_v33, %v124_v35  ;;  %v112_v38 = vadd.f32 %v111_v34, %v102_v36 }
  0x98   :  { %113 = vadd.xlane.f32.xlu0 %v112_v38  ;;  %v133_v40 = vadd.f32 %v132_v37, %v125_v39 }
  0x9a   :  { %134 = vadd.xlane.f32.xlu1 %v133_v40 }
 0x103   :  { %v109_v41 = vpop.xlane.xlu0 %108 }
 0x104   :  { %116 = vst.msk [vmem:[%s236_s2] sm:$0xff] %vm115_vm1, %v109_v41 }
 0x105   :  { %v130_v42 = vpop.xlane.xlu1 %129 }
 0x106   :  { %136 = vst.msk [vmem:[%s237_s3] sm:$0xff] %vm115_vm1, %v130_v42 }
 0x10b   :  { %v114_v43 = vpop.xlane.xlu0 %113 }
 0x10c   :  { %117 = vst.msk [vmem:[%s236_s2 + $0x8] sm:$0xff] %vm115_vm1, %v114_v43 }
 0x10d   :  { %v135_v44 = vpop.xlane.xlu1 %134 }
 0x10e   :  { %137 = vst.msk [vmem:[%s237_s3 + $0x8] sm:$0xff] %vm115_vm1, %v135_v44 }

// kernel: conv_t_block_forward.3
= control target key start
LH: loop header
LB: loop body
LE: loop exit
PB: predicated region body
PF: predicated region fallthrough
CT: control target
= control target key end

     0   :  { %v217_v3 = vmov 0   ;;  %vm49_vm0 = vcmask 130048   ;;  %s294_s3 = inlined_call_operand.vmem [shape: bf16[16,512], index: 3, kind: input, shape index: {}]   ;;  %s295_s0 = inlined_call_operand.vmem [shape: bf16[16,16], index: 0, kind: input, shape index: {}]   ;;  %s296_s1 = inlined_call_operand.vmem [shape: f32[16,1], index: 1, kind: input, shape index: {}]   ;;  %s297_s2 = inlined_call_operand.vmem [shape: f32[16,1], index: 2, kind: input, shape index: {}]   ;;  %s298_s4 = inlined_call_operand.vmem [shape: bf16[16,512], index: 4, kind: output, shape index: {}]  }
   0x1   :  { %v191_v0 = vld [vmem:[%s294_s3] sm:$0xf]  ;;  %v212_v1 = vld [vmem:[%s294_s3 + $0xc] sm:$0xf0]  ;;  %v210_v2 = vld [vmem:[%s294_s3 + $0x4] sm:$0xf]  ;;  %215 = vset.pattern.permute.xlu0 %v217_v3  ;;  %216 = vset.pattern.permute.xlu1 %v217_v3 }
   0x2   :  { %v192_v4 = vor.u32 %v212_v1, %v191_v0  ;;  %v193_v5 = vld [vmem:[%s294_s3 + $0x10] sm:$0xf0]  ;;  %v199_v6 = vld [vmem:[%s294_s3 + $0x8] sm:$0xf]  ;;  %v213_v7 = vld [vmem:[%s294_s3 + $0x14] sm:$0xf0] }
   0x3   :  { %v196_v8 = vor.u32 %v210_v2, %v193_v5  ;;  %v200_v9 = vor.u32 %v213_v7, %v199_v6  ;;  %v211_v10 = vld [vmem:[%s294_s3 + $0xc] sm:$0xf]  ;;  %v201_v11 = vld [vmem:[%s294_s3 + $0x18] sm:$0xf0]  ;;  %v209_v12 = vld [vmem:[%s295_s0] sm:$0xff] }
   0x4   :  { %60 = vmatpush.bf16.msra.mxu0 %v192_v4  ;;  %v204_v13 = vor.u32 %v211_v10, %v201_v11  ;;  %v109_v14 = vld [vmem:[%s296_s1] sm:$0xff]  ;;  %v110_v16 = vld [vmem:[%s296_s1 + $0x8] sm:$0xff] }
   0x5   :  { %v129_v15 = vld [vmem:[%s297_s2] sm:$0xff]  ;;  %74 = vmatpush.bf16.msra.mxu1 %v196_v8  ;;  %88 = vmatpush.bf16.msra.mxu2 %v200_v9  ;;  %v130_v17 = vld [vmem:[%s297_s2 + $0x8] sm:$0xff] }
   0x6   :  { %102 = vmatpush.bf16.msra.mxu3 %v204_v13  ;;  %113 = vperm.xlu0 %215, %v109_v14  }
   0x7   :  { %205 = vmatmul.msk.bf16.vlgmr.msra.gmra.mxu0 %vm49_vm0, %v209_v12  ;;  %133 = vperm.xlu1 %216, %v129_v15  }
   0x8   :  { %206 = vmatmul.msk.bf16.vlgmr.msra.gmra.mxu1 %vm49_vm0, %v209_v12  ;;  %207 = vmatmul.msk.bf16.vlgmr.msra.gmra.mxu2 %vm49_vm0, %v209_v12 }
   0x9   :  { %208 = vmatmul.msk.bf16.vlgmr.msra.gmra.mxu3 %vm49_vm0, %v209_v12 }
   0xe   :  { %118 = vperm.xlu0 %215, %v110_v16  }
   0xf   :  { %138 = vperm.xlu1 %216, %v130_v17  }
  0x78   :  { %v114_v18 = vpop.permute.xlu0 %113 }
  0x79   :  { %v134_v19 = vpop.permute.xlu1 %133 }
  0x80   :  { %v119_v29 = vpop.permute.xlu0 %118 }
  0x81   :  { %v139_v40 = vpop.permute.xlu1 %138 }
  0x84   :  { %v62_v20 = vpop.f32.mrf.mxu0 }
  0x85   :  { %v121_v21 = vmul.f32 %v114_v18, %v62_v20  ;;  %v76_v22 = vpop.f32.mrf.mxu1 }
  0x86   :  { %v122_v23 = vmul.f32 %v114_v18, %v76_v22 }
  0x87   :  { %v141_v24 = vadd.f32 %v134_v19, %v121_v21 }
  0x88   :  { %v142_v25 = vadd.f32 %v134_v19, %v122_v23 }
  0x89   :  { %vm149_vm1 = vcmp.ge.f32.partialorder %v141_v24, 0.0  ;;  %v157_v26 = vmul.f32 0.03, %v141_v24 }
  0x8a   :  { %vm150_vm2 = vcmp.ge.f32.partialorder %v142_v25, 0.0  ;;  %v158_v27 = vmul.f32 0.03, %v142_v25 }
  0x8b   :  { %v165_v28 = vsel %vm149_vm1, %v141_v24, %v157_v26  ;;  %v90_v30 = vpop.f32.mrf.mxu2 }
  0x8c   :  { %v166_v31 = vsel %vm150_vm2, %v142_v25, %v158_v27  ;;  %v123_v32 = vmul.f32 %v114_v18, %v90_v30  ;;  %v104_v33 = vpop.f32.mrf.mxu3  ;;  %v64_v34 = vpop.f32.mrf.mxu0 }
  0x8d   :  { %v173_v35 = vpack.c.bf16 %v166_v31, %v165_v28  ;;  %v124_v36 = vmul.f32 %v114_v18, %v104_v33  ;;  %v125_v37 = vmul.f32 %v119_v29, %v64_v34  ;;  %v78_v38 = vpop.f32.mrf.mxu1 }
  0x8e   :  { %v143_v39 = vadd.f32 %v134_v19, %v123_v32  ;;  %v126_v41 = vmul.f32 %v119_v29, %v78_v38 }
  0x8f   :  { %177 = vst [vmem:[%s298_s4] sm:$0xff] %v173_v35  ;;  %v144_v42 = vadd.f32 %v134_v19, %v124_v36  ;;  %v145_v43 = vadd.f32 %v139_v40, %v125_v37 }
  0x90   :  { %vm151_vm3 = vcmp.ge.f32.partialorder %v143_v39, 0.0  ;;  %v159_v44 = vmul.f32 0.03, %v143_v39  ;;  %v146_v45 = vadd.f32 %v139_v40, %v126_v41 }
  0x91   :  { %vm152_vm4 = vcmp.ge.f32.partialorder %v144_v42, 0.0  ;;  %v160_v46 = vmul.f32 0.03, %v144_v42  ;;  %vm153_vm5 = vcmp.ge.f32.partialorder %v145_v43, 0.0  ;;  %v161_v47 = vmul.f32 0.03, %v145_v43 }
  0x92   :  { %v167_v48 = vsel %vm151_vm3, %v143_v39, %v159_v44  ;;  %vm154_vm6 = vcmp.ge.f32.partialorder %v146_v45, 0.0  ;;  %v162_v49 = vmul.f32 0.03, %v146_v45 }
  0x93   :  { %v168_v50 = vsel %vm152_vm4, %v144_v42, %v160_v46  ;;  %v169_v51 = vsel %vm153_vm5, %v145_v43, %v161_v47  ;;  %v92_v52 = vpop.f32.mrf.mxu2 }
  0x94   :  { %v174_v53 = vpack.c.bf16 %v168_v50, %v167_v48  ;;  %v170_v54 = vsel %vm154_vm6, %v146_v45, %v162_v49  ;;  %v127_v55 = vmul.f32 %v119_v29, %v92_v52  ;;  %v106_v56 = vpop.f32.mrf.mxu3 }
  0x95   :  { %v175_v57 = vpack.c.bf16 %v170_v54, %v169_v51  ;;  %v128_v58 = vmul.f32 %v119_v29, %v106_v56 }
  0x96   :  { %178 = vst [vmem:[%s298_s4 + $0x8] sm:$0xff] %v174_v53  ;;  %v147_v59 = vadd.f32 %v139_v40, %v127_v55 }
  0x97   :  { %179 = vst [vmem:[%s298_s4 + $0x10] sm:$0xff] %v175_v57  ;;  %v148_v60 = vadd.f32 %v139_v40, %v128_v58 }
  0x98   :  { %vm155_vm7 = vcmp.ge.f32.partialorder %v147_v59, 0.0  ;;  %v163_v61 = vmul.f32 0.03, %v147_v59 }
  0x99   :  { %vm156_vm8 = vcmp.ge.f32.partialorder %v148_v60, 0.0  ;;  %v164_v62 = vmul.f32 0.03, %v148_v60 }
  0x9a   :  { %v171_v63 = vsel %vm155_vm7, %v147_v59, %v163_v61 }
  0x9b   :  { %v172_v0 = vsel %vm156_vm8, %v148_v60, %v164_v62 }
  0x9c   :  { %v176_v1 = vpack.c.bf16 %v172_v0, %v171_v63 }
  0x9e   :  { %180 = vst [vmem:[%s298_s4 + $0x18] sm:$0xff] %v176_v1 }

</bundles_post_ra>
